<compile_context>
chip_gen: v6e
topology: v6e:2x2x1
jax: 0.10.0
libtpu: 0.0.40
codegen_flags: <defaults>
</compile_context>

<pallas_src>
import functools

import jax
import jax.numpy as jnp
from jax.experimental import pallas as pl
from jax.experimental.pallas import tpu as pltpu

LANE = 128
BLOCK_ROWS = 8192  # (8192, 128) f32 = 4 MiB per buffer; vmem_limit_bytes set accordingly


# ----------------------------- Pallas kernel -------------------------------
def _spline_fwd_kernel(coef_ref, z_ref, o_ref, *, nb_knots, x_min, x_max, compute_dtype):
    """Forward spline evaluation on one (bm, 128) tile.

    Host-side precomputed per-segment line coefficients (nseg = nb_knots - 1):
        coef[k]        = intercept_k = y[k] - k * dy[k]
        coef[nseg + k] = slope_k     = dy[k] = y[k+1] - y[k]
    so that   out = intercept[seg] + slope[seg] * z_norm
    with      z_norm = (nb_knots - 1) * (z - x_min) / (x_max - x_min)
              seg    = #{k in 1..nseg-1 : z_norm >= k}   (threshold chain, last-true wins)
    which equals clip(floor(z_norm), 0, nseg-1), i.e. identical to
    y[i]*(1-t) + y[i+1]*t with t = z_norm - i, including linear extrapolation.
    """
    nseg = nb_knots - 1
    scale = float(nseg) / float(x_max - x_min)

    z = z_ref[...].astype(compute_dtype)
    z_norm = (z - x_min) * scale  # python-scalar operands keep compute_dtype

    # Ascending threshold chain: shared cmp per segment + 2 selects.  SMEM scalars are
    # read once each; the implicit scalar->tile broadcast inside jnp.where lowers to a
    # per-coefficient splat (emitted once per block, not per data vreg).
    intercept = jnp.broadcast_to(coef_ref[0].astype(compute_dtype), z_norm.shape)
    slope = jnp.broadcast_to(coef_ref[nseg].astype(compute_dtype), z_norm.shape)
    for k in range(1, nseg):
        sel = z_norm >= float(k)  # k <= 18: exactly representable even in bf16
        intercept = jnp.where(sel, coef_ref[k].astype(compute_dtype), intercept)
        slope = jnp.where(sel, coef_ref[nseg + k].astype(compute_dtype), slope)

    o_ref[...] = (intercept + slope * z_norm).astype(o_ref.dtype)


# ------------------------------ JAX glue ------------------------------------
def theta2y(theta, eps=1e-6):
    """Strictly-increasing parameterization: cumsum(cat(theta0, exp(theta1)+eps))."""
    return jnp.cumsum(
        jnp.concatenate([theta[:1], jnp.exp(theta[1:]) + eps], axis=0), axis=0
    )


def y2theta(y, eps=1e-6):
    return jnp.concatenate([y[:1], jnp.log(y[1:] - y[:-1] - eps)], axis=0)


def make_spline_params(nb_knots=20, x_min=0.0, x_max=1.0):
    """Deterministic init matching the PyTorch module's __init__."""
    alpha = jnp.zeros((1,), jnp.float32)
    beta = jnp.zeros((1,), jnp.float32)
    theta = y2theta(jnp.linspace(x_min, x_max, nb_knots, dtype=jnp.float32))
    return dict(alpha=alpha, beta=beta, theta=theta)


def spline_forward(z, theta, *, nb_knots=20, x_min=0.0, x_max=1.0,
                   is_strictly_increasing=True, block_rows=BLOCK_ROWS,
                   compute_dtype=None):
    """Forward pass of Spline (inverse=False), semantics identical to the torch module."""
    y = theta2y(theta) if is_strictly_increasing else theta
    y = y.astype(jnp.float32)

    # Per-segment line coefficients (tiny; live in SMEM inside the kernel).
    dy = y[1:] - y[:-1]                                  # (K-1,)
    ks = jnp.arange(nb_knots - 1, dtype=jnp.float32)
    intercept = y[:-1] - ks * dy                         # (K-1,)
    coef = jnp.concatenate([intercept, dy], axis=0)      # (2*(K-1),) f32

    orig_shape = z.shape
    orig_dtype = z.dtype
    if compute_dtype is None:
        # bf16 inputs -> bf16-native VALU chain (v6e/v7x).  On v5e (no bf16 VPU),
        # callers should pass compute_dtype=jnp.float32 explicitly.
        compute_dtype = jnp.bfloat16 if orig_dtype == jnp.bfloat16 else jnp.float32

    flat = z.reshape(-1)
    n = flat.shape[0]

    # Lane-divisible inputs (the common case, incl. the NCHW test shape) are zero-copy.
    # TODO(synk): replace the pad + reslice fallback for ragged n with an in-kernel
    # masked tail store to avoid the extra HBM round trip on non-lane-divisible inputs.
    pad = (-n) % LANE
    if pad:
        flat = jnp.pad(flat, (0, pad))
    rows = flat.shape[0] // LANE
    z2d = flat.reshape(rows, LANE)

    # Block selection: full-array block when tiny; otherwise a multiple-of-8 row count
    # chosen so the grid has >= 2 steps (lets "parallel" shard across v7x's 2 TCs),
    # capped at block_rows to amortize the ~0.35 us per-grid-step overhead.
    if rows <= 8:
        bm = rows
    else:
        half = -(-rows // 2)                 # cdiv(rows, 2)
        half = ((half + 7) // 8) * 8         # round up to sublane multiple
        bm = min(block_rows, half)
    grid = (pl.cdiv(rows, bm),)

    # Double-buffered in + out tiles must fit the scoped VMEM budget on every chip.
    itemsize = jnp.dtype(orig_dtype).itemsize
    io_bytes = 2 * 2 * bm * LANE * itemsize
    vmem_limit = int(min(max(io_bytes + (4 << 20), 16 << 20), 48 << 20))

    kernel = functools.partial(
        _spline_fwd_kernel,
        nb_knots=nb_knots,
        x_min=float(x_min),
        x_max=float(x_max),
        compute_dtype=compute_dtype,
    )

    out2d = pl.pallas_call(
        kernel,
        out_shape=jax.ShapeDtypeStruct((rows, LANE), orig_dtype),
        grid=grid,
        in_specs=[
            pl.BlockSpec(memory_space=pltpu.MemorySpace.SMEM),  # line coefficients
            pl.BlockSpec((bm, LANE), lambda i: (i, 0)),         # z tile (io dtype)
        ],
        out_specs=pl.BlockSpec((bm, LANE), lambda i: (i, 0)),
        compiler_params=pltpu.CompilerParams(
            dimension_semantics=("parallel",),
            vmem_limit_bytes=vmem_limit,
        ),
    )(coef, z2d)

    if pad:
        out = out2d.reshape(-1)[:n].reshape(orig_shape)
    else:
        out = out2d.reshape(orig_shape)
    return out  # already in the caller's dtype


# TODO(synk): the inverse=True path (torch.searchsorted over knots + alpha*z+beta bias)
# is not implemented; the requested forward pass defaults to inverse=False, where
# alpha/beta are unused (matching the torch module).


# ------------------------------- reference ----------------------------------
def spline_forward_ref(z, theta, *, nb_knots=20, x_min=0.0, x_max=1.0):
    y = theta2y(theta)
    flat = z.reshape(-1).astype(jnp.float32)
    z_norm = (nb_knots - 1) * (flat - x_min) / (x_max - x_min)
    i = jnp.clip(jnp.floor(z_norm), 0, nb_knots - 2).astype(jnp.int32)
    y_left = jnp.take(y, i)
    y_right = jnp.take(y, i + 1)
    t = z_norm - i
    return (y_left * (1.0 - t) + y_right * t).reshape(z.shape)


if __name__ == "__main__":
    key = jax.random.PRNGKey(0)
    # NCHW input, small shapes; values span outside [0, 1] to exercise the
    # linear-extrapolation branches (segment clamp at both ends).
    x = jax.random.uniform(key, (2, 4, 16, 16), jnp.float32, minval=-0.5, maxval=1.5)

    params = make_spline_params(nb_knots=20, x_min=0.0, x_max=1.0)

    out = spline_forward(x, params["theta"], nb_knots=20, x_min=0.0, x_max=1.0)
    out = jax.block_until_ready(out)

    ref = spline_forward_ref(x, params["theta"], nb_knots=20, x_min=0.0, x_max=1.0)
    assert out.shape == x.shape and out.dtype == x.dtype
    err = jnp.max(jnp.abs(out.astype(jnp.float32) - ref))
    assert err < 1e-4, f"mismatch vs reference: {err}"

    print("KERNEL_OK")
</pallas_src>

<mosaic_0001>
module attributes {stable_mosaic.version = 11 : i64} {
  func.func @_spline_fwd_kernel(%arg0: i32, %arg1: memref<38xf32, #tpu.memory_space<smem>>, %arg2: memref<8x128xf32, #tpu.memory_space<vmem>>, %arg3: memref<8x128xf32, #tpu.memory_space<vmem>>) attributes {dimension_semantics = [#tpu.dimension_semantics<parallel>], iteration_bounds = array<i64: 2>, scalar_prefetch = 0 : i64, scratch_operands = 0 : i64, tpu.core_type = #tpu.core_type<tc>, window_params = [{transform_indices = @transform_0, window_bounds = array<i64: 38>}, {transform_indices = @transform_1, window_bounds = array<i64: 8, 128>}, {transform_indices = @transform_2, window_bounds = array<i64: 8, 128>}]} {
    %c0 = arith.constant 0 : index
    %c0_0 = arith.constant 0 : index
    %0 = vector.load %arg2[%c0, %c0_0] : memref<8x128xf32, #tpu.memory_space<vmem>>, vector<8x128xf32>
    %cst = arith.constant 0.000000e+00 : f32
    %1 = vector.broadcast %cst : f32 to vector<8x128xf32>
    %2 = arith.subf %0, %1 : vector<8x128xf32>
    %cst_1 = arith.constant 1.900000e+01 : f32
    %3 = vector.broadcast %cst_1 : f32 to vector<8x128xf32>
    %4 = arith.mulf %2, %3 : vector<8x128xf32>
    %c0_2 = arith.constant 0 : index
    %5 = memref.load %arg1[%c0_2] : memref<38xf32, #tpu.memory_space<smem>>
    %6 = vector.broadcast %5 : f32 to vector<8x128xf32>
    %c19 = arith.constant 19 : index
    %7 = memref.load %arg1[%c19] : memref<38xf32, #tpu.memory_space<smem>>
    %8 = vector.broadcast %7 : f32 to vector<8x128xf32>
    %cst_3 = arith.constant 1.000000e+00 : f32
    %9 = vector.broadcast %cst_3 : f32 to vector<8x128xf32>
    %10 = arith.cmpf oge, %4, %9 : vector<8x128xf32>
    %c1 = arith.constant 1 : index
    %11 = memref.load %arg1[%c1] : memref<38xf32, #tpu.memory_space<smem>>
    %12 = vector.broadcast %11 : f32 to vector<8x128xf32>
    %13 = arith.select %10, %12, %6 : vector<8x128xi1>, vector<8x128xf32>
    %c20 = arith.constant 20 : index
    %14 = memref.load %arg1[%c20] : memref<38xf32, #tpu.memory_space<smem>>
    %15 = vector.broadcast %14 : f32 to vector<8x128xf32>
    %16 = arith.select %10, %15, %8 : vector<8x128xi1>, vector<8x128xf32>
    %cst_4 = arith.constant 2.000000e+00 : f32
    %17 = vector.broadcast %cst_4 : f32 to vector<8x128xf32>
    %18 = arith.cmpf oge, %4, %17 : vector<8x128xf32>
    %c2 = arith.constant 2 : index
    %19 = memref.load %arg1[%c2] : memref<38xf32, #tpu.memory_space<smem>>
    %20 = vector.broadcast %19 : f32 to vector<8x128xf32>
    %21 = arith.select %18, %20, %13 : vector<8x128xi1>, vector<8x128xf32>
    %c21 = arith.constant 21 : index
    %22 = memref.load %arg1[%c21] : memref<38xf32, #tpu.memory_space<smem>>
    %23 = vector.broadcast %22 : f32 to vector<8x128xf32>
    %24 = arith.select %18, %23, %16 : vector<8x128xi1>, vector<8x128xf32>
    %cst_5 = arith.constant 3.000000e+00 : f32
    %25 = vector.broadcast %cst_5 : f32 to vector<8x128xf32>
    %26 = arith.cmpf oge, %4, %25 : vector<8x128xf32>
    %c3 = arith.constant 3 : index
    %27 = memref.load %arg1[%c3] : memref<38xf32, #tpu.memory_space<smem>>
    %28 = vector.broadcast %27 : f32 to vector<8x128xf32>
    %29 = arith.select %26, %28, %21 : vector<8x128xi1>, vector<8x128xf32>
    %c22 = arith.constant 22 : index
    %30 = memref.load %arg1[%c22] : memref<38xf32, #tpu.memory_space<smem>>
    %31 = vector.broadcast %30 : f32 to vector<8x128xf32>
    %32 = arith.select %26, %31, %24 : vector<8x128xi1>, vector<8x128xf32>
    %cst_6 = arith.constant 4.000000e+00 : f32
    %33 = vector.broadcast %cst_6 : f32 to vector<8x128xf32>
    %34 = arith.cmpf oge, %4, %33 : vector<8x128xf32>
    %c4 = arith.constant 4 : index
    %35 = memref.load %arg1[%c4] : memref<38xf32, #tpu.memory_space<smem>>
    %36 = vector.broadcast %35 : f32 to vector<8x128xf32>
    %37 = arith.select %34, %36, %29 : vector<8x128xi1>, vector<8x128xf32>
    %c23 = arith.constant 23 : index
    %38 = memref.load %arg1[%c23] : memref<38xf32, #tpu.memory_space<smem>>
    %39 = vector.broadcast %38 : f32 to vector<8x128xf32>
    %40 = arith.select %34, %39, %32 : vector<8x128xi1>, vector<8x128xf32>
    %cst_7 = arith.constant 5.000000e+00 : f32
    %41 = vector.broadcast %cst_7 : f32 to vector<8x128xf32>
    %42 = arith.cmpf oge, %4, %41 : vector<8x128xf32>
    %c5 = arith.constant 5 : index
    %43 = memref.load %arg1[%c5] : memref<38xf32, #tpu.memory_space<smem>>
    %44 = vector.broadcast %43 : f32 to vector<8x128xf32>
    %45 = arith.select %42, %44, %37 : vector<8x128xi1>, vector<8x128xf32>
    %c24 = arith.constant 24 : index
    %46 = memref.load %arg1[%c24] : memref<38xf32, #tpu.memory_space<smem>>
    %47 = vector.broadcast %46 : f32 to vector<8x128xf32>
    %48 = arith.select %42, %47, %40 : vector<8x128xi1>, vector<8x128xf32>
    %cst_8 = arith.constant 6.000000e+00 : f32
    %49 = vector.broadcast %cst_8 : f32 to vector<8x128xf32>
    %50 = arith.cmpf oge, %4, %49 : vector<8x128xf32>
    %c6 = arith.constant 6 : index
    %51 = memref.load %arg1[%c6] : memref<38xf32, #tpu.memory_space<smem>>
    %52 = vector.broadcast %51 : f32 to vector<8x128xf32>
    %53 = arith.select %50, %52, %45 : vector<8x128xi1>, vector<8x128xf32>
    %c25 = arith.constant 25 : index
    %54 = memref.load %arg1[%c25] : memref<38xf32, #tpu.memory_space<smem>>
    %55 = vector.broadcast %54 : f32 to vector<8x128xf32>
    %56 = arith.select %50, %55, %48 : vector<8x128xi1>, vector<8x128xf32>
    %cst_9 = arith.constant 7.000000e+00 : f32
    %57 = vector.broadcast %cst_9 : f32 to vector<8x128xf32>
    %58 = arith.cmpf oge, %4, %57 : vector<8x128xf32>
    %c7 = arith.constant 7 : index
    %59 = memref.load %arg1[%c7] : memref<38xf32, #tpu.memory_space<smem>>
    %60 = vector.broadcast %59 : f32 to vector<8x128xf32>
    %61 = arith.select %58, %60, %53 : vector<8x128xi1>, vector<8x128xf32>
    %c26 = arith.constant 26 : index
    %62 = memref.load %arg1[%c26] : memref<38xf32, #tpu.memory_space<smem>>
    %63 = vector.broadcast %62 : f32 to vector<8x128xf32>
    %64 = arith.select %58, %63, %56 : vector<8x128xi1>, vector<8x128xf32>
    %cst_10 = arith.constant 8.000000e+00 : f32
    %65 = vector.broadcast %cst_10 : f32 to vector<8x128xf32>
    %66 = arith.cmpf oge, %4, %65 : vector<8x128xf32>
    %c8 = arith.constant 8 : index
    %67 = memref.load %arg1[%c8] : memref<38xf32, #tpu.memory_space<smem>>
    %68 = vector.broadcast %67 : f32 to vector<8x128xf32>
    %69 = arith.select %66, %68, %61 : vector<8x128xi1>, vector<8x128xf32>
    %c27 = arith.constant 27 : index
    %70 = memref.load %arg1[%c27] : memref<38xf32, #tpu.memory_space<smem>>
    %71 = vector.broadcast %70 : f32 to vector<8x128xf32>
    %72 = arith.select %66, %71, %64 : vector<8x128xi1>, vector<8x128xf32>
    %cst_11 = arith.constant 9.000000e+00 : f32
    %73 = vector.broadcast %cst_11 : f32 to vector<8x128xf32>
    %74 = arith.cmpf oge, %4, %73 : vector<8x128xf32>
    %c9 = arith.constant 9 : index
    %75 = memref.load %arg1[%c9] : memref<38xf32, #tpu.memory_space<smem>>
    %76 = vector.broadcast %75 : f32 to vector<8x128xf32>
    %77 = arith.select %74, %76, %69 : vector<8x128xi1>, vector<8x128xf32>
    %c28 = arith.constant 28 : index
    %78 = memref.load %arg1[%c28] : memref<38xf32, #tpu.memory_space<smem>>
    %79 = vector.broadcast %78 : f32 to vector<8x128xf32>
    %80 = arith.select %74, %79, %72 : vector<8x128xi1>, vector<8x128xf32>
    %cst_12 = arith.constant 1.000000e+01 : f32
    %81 = vector.broadcast %cst_12 : f32 to vector<8x128xf32>
    %82 = arith.cmpf oge, %4, %81 : vector<8x128xf32>
    %c10 = arith.constant 10 : index
    %83 = memref.load %arg1[%c10] : memref<38xf32, #tpu.memory_space<smem>>
    %84 = vector.broadcast %83 : f32 to vector<8x128xf32>
    %85 = arith.select %82, %84, %77 : vector<8x128xi1>, vector<8x128xf32>
    %c29 = arith.constant 29 : index
    %86 = memref.load %arg1[%c29] : memref<38xf32, #tpu.memory_space<smem>>
    %87 = vector.broadcast %86 : f32 to vector<8x128xf32>
    %88 = arith.select %82, %87, %80 : vector<8x128xi1>, vector<8x128xf32>
    %cst_13 = arith.constant 1.100000e+01 : f32
    %89 = vector.broadcast %cst_13 : f32 to vector<8x128xf32>
    %90 = arith.cmpf oge, %4, %89 : vector<8x128xf32>
    %c11 = arith.constant 11 : index
    %91 = memref.load %arg1[%c11] : memref<38xf32, #tpu.memory_space<smem>>
    %92 = vector.broadcast %91 : f32 to vector<8x128xf32>
    %93 = arith.select %90, %92, %85 : vector<8x128xi1>, vector<8x128xf32>
    %c30 = arith.constant 30 : index
    %94 = memref.load %arg1[%c30] : memref<38xf32, #tpu.memory_space<smem>>
    %95 = vector.broadcast %94 : f32 to vector<8x128xf32>
    %96 = arith.select %90, %95, %88 : vector<8x128xi1>, vector<8x128xf32>
    %cst_14 = arith.constant 1.200000e+01 : f32
    %97 = vector.broadcast %cst_14 : f32 to vector<8x128xf32>
    %98 = arith.cmpf oge, %4, %97 : vector<8x128xf32>
    %c12 = arith.constant 12 : index
    %99 = memref.load %arg1[%c12] : memref<38xf32, #tpu.memory_space<smem>>
    %100 = vector.broadcast %99 : f32 to vector<8x128xf32>
    %101 = arith.select %98, %100, %93 : vector<8x128xi1>, vector<8x128xf32>
    %c31 = arith.constant 31 : index
    %102 = memref.load %arg1[%c31] : memref<38xf32, #tpu.memory_space<smem>>
    %103 = vector.broadcast %102 : f32 to vector<8x128xf32>
    %104 = arith.select %98, %103, %96 : vector<8x128xi1>, vector<8x128xf32>
    %cst_15 = arith.constant 1.300000e+01 : f32
    %105 = vector.broadcast %cst_15 : f32 to vector<8x128xf32>
    %106 = arith.cmpf oge, %4, %105 : vector<8x128xf32>
    %c13 = arith.constant 13 : index
    %107 = memref.load %arg1[%c13] : memref<38xf32, #tpu.memory_space<smem>>
    %108 = vector.broadcast %107 : f32 to vector<8x128xf32>
    %109 = arith.select %106, %108, %101 : vector<8x128xi1>, vector<8x128xf32>
    %c32 = arith.constant 32 : index
    %110 = memref.load %arg1[%c32] : memref<38xf32, #tpu.memory_space<smem>>
    %111 = vector.broadcast %110 : f32 to vector<8x128xf32>
    %112 = arith.select %106, %111, %104 : vector<8x128xi1>, vector<8x128xf32>
    %cst_16 = arith.constant 1.400000e+01 : f32
    %113 = vector.broadcast %cst_16 : f32 to vector<8x128xf32>
    %114 = arith.cmpf oge, %4, %113 : vector<8x128xf32>
    %c14 = arith.constant 14 : index
    %115 = memref.load %arg1[%c14] : memref<38xf32, #tpu.memory_space<smem>>
    %116 = vector.broadcast %115 : f32 to vector<8x128xf32>
    %117 = arith.select %114, %116, %109 : vector<8x128xi1>, vector<8x128xf32>
    %c33 = arith.constant 33 : index
    %118 = memref.load %arg1[%c33] : memref<38xf32, #tpu.memory_space<smem>>
    %119 = vector.broadcast %118 : f32 to vector<8x128xf32>
    %120 = arith.select %114, %119, %112 : vector<8x128xi1>, vector<8x128xf32>
    %cst_17 = arith.constant 1.500000e+01 : f32
    %121 = vector.broadcast %cst_17 : f32 to vector<8x128xf32>
    %122 = arith.cmpf oge, %4, %121 : vector<8x128xf32>
    %c15 = arith.constant 15 : index
    %123 = memref.load %arg1[%c15] : memref<38xf32, #tpu.memory_space<smem>>
    %124 = vector.broadcast %123 : f32 to vector<8x128xf32>
    %125 = arith.select %122, %124, %117 : vector<8x128xi1>, vector<8x128xf32>
    %c34 = arith.constant 34 : index
    %126 = memref.load %arg1[%c34] : memref<38xf32, #tpu.memory_space<smem>>
    %127 = vector.broadcast %126 : f32 to vector<8x128xf32>
    %128 = arith.select %122, %127, %120 : vector<8x128xi1>, vector<8x128xf32>
    %cst_18 = arith.constant 1.600000e+01 : f32
    %129 = vector.broadcast %cst_18 : f32 to vector<8x128xf32>
    %130 = arith.cmpf oge, %4, %129 : vector<8x128xf32>
    %c16 = arith.constant 16 : index
    %131 = memref.load %arg1[%c16] : memref<38xf32, #tpu.memory_space<smem>>
    %132 = vector.broadcast %131 : f32 to vector<8x128xf32>
    %133 = arith.select %130, %132, %125 : vector<8x128xi1>, vector<8x128xf32>
    %c35 = arith.constant 35 : index
    %134 = memref.load %arg1[%c35] : memref<38xf32, #tpu.memory_space<smem>>
    %135 = vector.broadcast %134 : f32 to vector<8x128xf32>
    %136 = arith.select %130, %135, %128 : vector<8x128xi1>, vector<8x128xf32>
    %cst_19 = arith.constant 1.700000e+01 : f32
    %137 = vector.broadcast %cst_19 : f32 to vector<8x128xf32>
    %138 = arith.cmpf oge, %4, %137 : vector<8x128xf32>
    %c17 = arith.constant 17 : index
    %139 = memref.load %arg1[%c17] : memref<38xf32, #tpu.memory_space<smem>>
    %140 = vector.broadcast %139 : f32 to vector<8x128xf32>
    %141 = arith.select %138, %140, %133 : vector<8x128xi1>, vector<8x128xf32>
    %c36 = arith.constant 36 : index
    %142 = memref.load %arg1[%c36] : memref<38xf32, #tpu.memory_space<smem>>
    %143 = vector.broadcast %142 : f32 to vector<8x128xf32>
    %144 = arith.select %138, %143, %136 : vector<8x128xi1>, vector<8x128xf32>
    %cst_20 = arith.constant 1.800000e+01 : f32
    %145 = vector.broadcast %cst_20 : f32 to vector<8x128xf32>
    %146 = arith.cmpf oge, %4, %145 : vector<8x128xf32>
    %c18 = arith.constant 18 : index
    %147 = memref.load %arg1[%c18] : memref<38xf32, #tpu.memory_space<smem>>
    %148 = vector.broadcast %147 : f32 to vector<8x128xf32>
    %149 = arith.select %146, %148, %141 : vector<8x128xi1>, vector<8x128xf32>
    %c37 = arith.constant 37 : index
    %150 = memref.load %arg1[%c37] : memref<38xf32, #tpu.memory_space<smem>>
    %151 = vector.broadcast %150 : f32 to vector<8x128xf32>
    %152 = arith.select %146, %151, %144 : vector<8x128xi1>, vector<8x128xf32>
    %153 = arith.mulf %152, %4 : vector<8x128xf32>
    %154 = arith.addf %149, %153 : vector<8x128xf32>
    %c0_21 = arith.constant 0 : index
    %c0_22 = arith.constant 0 : index
    %155 = vector.load %arg3[%c0_21, %c0_22] : memref<8x128xf32, #tpu.memory_space<vmem>>, vector<8x128xf32>
    tpu.vector_store %arg3[%c0_21, %c0_22], %154 {strides = array<i32>} : memref<8x128xf32, #tpu.memory_space<vmem>>, vector<8x128xf32>,
    return
  }
  func.func @transform_0(%arg0: i32) -> i32 {
    %c0_i32 = arith.constant 0 : i32
    %c0_i32_0 = arith.constant 0 : i32
    return %c0_i32 : i32
  }
  func.func @transform_1(%arg0: i32) -> (i32, i32) {
    %c0_i32 = arith.constant 0 : i32
    %c0_i32_0 = arith.constant 0 : i32
    return %arg0, %c0_i32 : i32, i32
  }
  func.func @transform_2(%arg0: i32) -> (i32, i32) {
    %c0_i32 = arith.constant 0 : i32
    %c0_i32_0 = arith.constant 0 : i32
    return %arg0, %c0_i32 : i32, i32
  }
}

</mosaic_0001>

<bundles_post_ra>
// kernel: tpu_custom_call.1
= control target key start
LH: loop header
LB: loop body
LE: loop exit
PB: predicated region body
PF: predicated region fallthrough
CT: control target
= control target key end

     0   :  { %7 = vsyncpa [#allocation5], 0  ;;  %s808_s0 = inlined_call_operand.hbm [shape: f32[38], index: 0, kind: input, shape index: {}]   ;;  %s809_s1 = inlined_call_operand.hbm [shape: f32[16,128], index: 1, kind: input, shape index: {}]   ;;  %s810_s2 = inlined_call_operand.hbm [shape: f32[16,128], index: 2, kind: output, shape index: {}]  }
   0x1   :  { %8 = vsyncpa [#allocation3], 0 }
   0x2   :  { %10 = vsyncpa [#allocation3 + $0x1], 0 }
   0x3   :  { %11 = vsyncpa [#allocation4], 0 }
   0x4   :  { %13 = vsyncpa [#allocation4 + $0x1], 0  ;;  %s637_s9 = smov 0   ;;  %s639_s10 = smov 0  }
   0x5   :  { %s641_s11 = smov 0   ;;  %s643_s12 = smov 0  }
   0x6 LB: > { %s658_s13 = sadd.s32 4294967295, %s617_s12   ;;  %s402_s14 = sadd.s32 4294967294, %s617_s12   ;;  %s617_s12 = sphi %s643_s12, %s830_s12   ;;  %s613_s11 = sphi %s641_s11, %s829_s11   ;;  %s609_s10 = sphi %s639_s10, %s828_s10   ;;  %s605_s9 = sphi %s637_s9, %s827_s9  }
   0x7   : > { %p60_p0 = scmp.ne.s32.totalorder %s609_s10, %s605_s9  ;;  %p811_p1 = scmp.eq.s32.totalorder %s658_s13, 0 }
   0x8   : > { %p84_p2 = scmp.eq.s32.totalorder %s658_s13, 1  ;;  %p90_p3 = scmp.eq.s32.totalorder %s402_s14, 1 }
   0x9   : > { %p667_p4 = por %p811_p1, %p60_p0  ;;  %p403_p5 = scmp.ge.s32.totalorder %s617_s12, 1 }
   0xa   : > { %p672_p6 = por %p90_p3, %p60_p0  ;;  %p97_p7 = scmp.lt.s32.totalorder %s617_s12, 3 }
   0xb   : > { %s815_s15 = scalar_select %p667_p4, 1, 0 }
   0xc   : > { %s816_s16 = scalar_select %p672_p6, 1, 0 }
   0xd   : > { %p677_p8 = pnand %p403_p5, %p97_p7  ;;  %s683_s18 = sadd.s32 1, %s617_s12  }
   0xe   : > { %s44_s19 = ssub.s32 %s617_s12, %s683_s18  ;;  %s47_s20 = sadd.s32 1, %s613_s11 }
   0xf   : > { %s817_s17 = scalar_select %p677_p8, 1, 0 }
  0x10   : > { %p461_p10 = pneg %p677_p8  ;;  %p45_p12 = scmp.eq.s32.totalorder %s44_s19, 0 }
  0x11   : > { %p54_p13 = scmp.ne.s32.totalorder %s613_s11, %s609_s10  ;;  %p55_p0 = scmp.eq.s32.totalorder %s617_s12, 0 }
  0x12   : > { %p462_p11 = pnand %p461_p10, %p811_p1  ;;  %p474_p3 = scmp.lt.s32.totalorder %s617_s12, 2 }
  0x13   : > { %s619_s21 = smov [#allocation2]   ;;  %p56_p5 = por %p55_p0, %p54_p13 }
  0x14   : > { %464 = dma.hbm_to_smem (!%p462_p11), %s808_s0, 16, %s619_s21, [#allocation5]  }
  0x15   : > { %s700_s24 = scalar_select %p45_p12, %s613_s11, %s47_s20  }
  0x16   : > { %p704_p7 = por %p84_p2, %p54_p13  ;;  %s119_s26 = sand.u32 1, %s613_s11  }
  0x17   : > { %s407_s27 = sshll.u32 %s617_s12, 7  ;;  %s406_s28 = sshll.u32 %s119_s26, 3 }
  0x18   : > { %s818_s25 = scalar_select %p704_p7, 1, 0 }
  0x19   : > { %s713_s3 = scalar_lea.hbm %s809_s1, %s407_s27  ;;  %s123_s4 = scalar_lea.vmem [#allocation6], %s406_s28 }
  0x1a   : > { %s130_s5 = sshll.u32 %s123_s4, 4  ;;  %p715_p10 = pnand %p474_p3, %p56_p5  ;;  %s131_s5 = int_to_ptr.vmem [resolvable:$true] %s130_s5 }
  0x1b   : > { %s120_s7 = scalar_lea.sflag [#allocation3], %s119_s26  ;;  %s521_s8 = scalar_lea.hbm %s713_s3, 128 }
  0x1c   : > { %p522_p2 = scmp.ne.s32.totalorder %s713_s3, %s521_s8  ;;  %p523_p11 = pneg %p715_p10 }
  0x1d   : > { %s526_s20 = scalar_lea.hbm %s809_s1, 256  ;;  %p527_p0 = scmp.lt.s32.totalorder %s713_s3, %s809_s1 }
  0x1e   : > { %p524_p12 = pnand %p523_p11, %p522_p2  ;;  %p528_p3 = scmp.lt.s32.totalorder %s526_s20, %s521_s8 }
  0x20   : > { %p525_p13 = pneg %p524_p12  ;;  %p529_p5 = por %p528_p3, %p527_p0 }
  0x22   : > { %p530_p9 = pnand %p529_p5, %p525_p13 }
  0x24   : > { %533 = shalt.err (!%p530_p9)
}
  0x25   : > { %s534_s23 = scalar_lea.vmem %s131_s5, 128  ;;  %s620_s26 = smov [#allocation6]  }
  0x26   : > { %p535_p1 = scmp.ne.s32.totalorder %s131_s5, %s534_s23  ;;  %s539_s27 = sshll.u32 %s620_s26, 4  ;;  %s540_s27 = int_to_ptr.vmem [resolvable:$false] %s539_s27 }
  0x27   : > { %s541_s28 = scalar_lea.vmem %s540_s27, 256  ;;  %p542_p2 = scmp.lt.s32.totalorder %s131_s5, %s540_s27 }
  0x28   : > { %p537_p6 = pnand %p535_p1, %p523_p11  ;;  %p543_p12 = scmp.lt.s32.totalorder %s541_s28, %s534_s23 }
  0x2a   : > { %p538_p7 = pneg %p537_p6  ;;  %p544_p4 = por %p543_p12, %p542_p2 }
  0x2c   : > { %p545_p8 = pnand %p544_p4, %p538_p7 }
  0x2e   : > { %548 = shalt.err (!%p545_p8)
}
  0x2f   : > { %468 = dma.hbm_to_vmem [thread:$0]  (!%p715_p10), %s713_s3, 128, %s131_s5, %s120_s7  }
  0x30   : > { %p820_p13 = scmp.ne.s32.totalorder %s817_s17, 0 }
  0x31   : > { %p821_p9 = scmp.eq.s32.totalorder (!%p820_p13), %s658_s13, 0 }
  0x32   : > { %139 = sbr.rel (%p820_p13) target bundleno = 124 (0x7c), region = 28 }
  0x37   : > { %592 = dma.done.wait (%p821_p9), [#allocation5], 16   ;;  %p822_p1 = pmov %p821_p9 }
  0x38   : > { %s740_s29 = sand.u32 1, %s609_s10   ;;  %p823_p4 = scmp.ne.s32.totalorder %s815_s15, 0 }
  0x39   : > { %594 = vsyncadd (%p822_p1), [#allocation5], 4294967280  ;;  %s410_s30 = sshll.u32 %s740_s29, 3  ;;  %s146_s4 = scalar_lea.sflag [#allocation3], %s740_s29 }
  0x3a   : > { %s149_s3 = scalar_lea.vmem [#allocation6], %s410_s30 }
  0x3b   : > { %596 = dma.done.wait (%p823_p4), %s146_s4, 128  }
  0x3c   : > { %598 = vsyncadd (%p823_p4), %s146_s4, 4294967168 }
  0x3d   : > { %154 = sfence }
  0x3e   : > { %v171_v0 = vld [vmem:[%s149_s3] sm:$0xff]  ;;  %s173_s17 = sld [smem:[#allocation2]]  ;;  %p824_p8 = scmp.ne.s32.totalorder %s818_s25, 0 }
  0x3f   : > { %s412_s5 = sld [smem:[#allocation2 + $0x13]]  ;;  %v750_v1 = vmul.f32 19.0, %v171_v0 }
  0x40   : > { %s413_s6 = sld [smem:[#allocation2 + $0x1]] }
  0x41   : > { %s414_s7 = sld [smem:[#allocation2 + $0x14]]  ;;  %vm177_vm0 = vcmp.ge.f32.partialorder %v750_v1, 1.0  ;;  %vm184_vm1 = vcmp.ge.f32.partialorder %v750_v1, 2.0  ;;  %vm191_vm2 = vcmp.ge.f32.partialorder %v750_v1, 3.0  ;;  %vm198_vm3 = vcmp.ge.f32.partialorder %v750_v1, 4.0 }
  0x42   : > { %s415_s8 = sld [smem:[#allocation2 + $0x2]]  ;;  %vm205_vm4 = vcmp.ge.f32.partialorder %v750_v1, 5.0  ;;  %vm212_vm5 = vcmp.ge.f32.partialorder %v750_v1, 6.0  ;;  %vm219_vm6 = vcmp.ge.f32.partialorder %v750_v1, 7.0  ;;  %vm226_vm7 = vcmp.ge.f32.partialorder %v750_v1, 8.0 }
  0x43   : > { %s416_s14 = sld [smem:[#allocation2 + $0x15]]  ;;  %vm233_vm8 = vcmp.ge.f32.partialorder %v750_v1, 9.0  ;;  %vm240_vm9 = vcmp.ge.f32.partialorder %v750_v1, 10.0  ;;  %vm247_vm10 = vcmp.ge.f32.partialorder %v750_v1, 11.0  ;;  %vm254_vm11 = vcmp.ge.f32.partialorder %v750_v1, 12.0 }
  0x44   : > { %v174_v2 = vstv %s173_s17  ;;  %s417_s19 = sld [smem:[#allocation2 + $0x3]]  ;;  %vm261_vm12 = vcmp.ge.f32.partialorder %v750_v1, 13.0  ;;  %vm268_vm13 = vcmp.ge.f32.partialorder %v750_v1, 14.0  ;;  %vm275_vm14 = vcmp.ge.f32.partialorder %v750_v1, 15.0 }
  0x45   : > { %v176_v3 = vstv %s412_s5  ;;  %s418_s20 = sld [smem:[#allocation2 + $0x16]]  ;;  %vm282_vm15 = vcmp.ge.f32.partialorder %v750_v1, 16.0 }
  0x46   : > { %v179_v4 = vstv %s413_s6  ;;  %s419_s21 = sld [smem:[#allocation2 + $0x4]] }
  0x47   : > { %v180_v5 = vsel %vm177_vm0, %v179_v4, %v174_v2  ;;  %v182_v6 = vstv %s414_s7  ;;  %s420_s15 = sld [smem:[#allocation2 + $0x17]] }
  0x48   : > { %v183_v7 = vsel %vm177_vm0, %v182_v6, %v176_v3  ;;  %v186_v8 = vstv %s415_s8  ;;  %s421_s22 = sld [smem:[#allocation2 + $0x5]]  ;;  %vm289_vm0 = vcmp.ge.f32.partialorder %v750_v1, 17.0 }
  0x49   : > { %v187_v9 = vsel %vm184_vm1, %v186_v8, %v180_v5  ;;  %v189_v10 = vstv %s416_s14  ;;  %s422_s23 = sld [smem:[#allocation2 + $0x18]] }
  0x4a   : > { %v190_v11 = vsel %vm184_vm1, %v189_v10, %v183_v7  ;;  %v193_v12 = vstv %s417_s19  ;;  %s423_s26 = sld [smem:[#allocation2 + $0x6]]  ;;  %vm296_vm1 = vcmp.ge.f32.partialorder %v750_v1, 18.0 }
  0x4b   : > { %v194_v13 = vsel %vm191_vm2, %v193_v12, %v187_v9  ;;  %v196_v14 = vstv %s418_s20  ;;  %s424_s27 = sld [smem:[#allocation2 + $0x19]] }
  0x4c   : > { %v197_v15 = vsel %vm191_vm2, %v196_v14, %v190_v11  ;;  %v200_v16 = vstv %s419_s21  ;;  %s425_s28 = sld [smem:[#allocation2 + $0x7]] }
  0x4d   : > { %v201_v17 = vsel %vm198_vm3, %v200_v16, %v194_v13  ;;  %v203_v18 = vstv %s420_s15  ;;  %s426_s4 = sld [smem:[#allocation2 + $0x1a]] }
  0x4e   : > { %v204_v19 = vsel %vm198_vm3, %v203_v18, %v197_v15  ;;  %v207_v20 = vstv %s421_s22  ;;  %s427_s3 = sld [smem:[#allocation2 + $0x8]] }
  0x4f   : > { %v208_v21 = vsel %vm205_vm4, %v207_v20, %v201_v17  ;;  %v210_v22 = vstv %s422_s23  ;;  %s428_s17 = sld [smem:[#allocation2 + $0x1b]] }
  0x50   : > { %v211_v23 = vsel %vm205_vm4, %v210_v22, %v204_v19  ;;  %v214_v24 = vstv %s423_s26  ;;  %s429_s5 = sld [smem:[#allocation2 + $0x9]] }
  0x51   : > { %v215_v25 = vsel %vm212_vm5, %v214_v24, %v208_v21  ;;  %v217_v26 = vstv %s424_s27  ;;  %s430_s6 = sld [smem:[#allocation2 + $0x1c]] }
  0x52   : > { %v218_v27 = vsel %vm212_vm5, %v217_v26, %v211_v23  ;;  %v221_v28 = vstv %s425_s28  ;;  %s431_s7 = sld [smem:[#allocation2 + $0xa]] }
  0x53   : > { %v222_v29 = vsel %vm219_vm6, %v221_v28, %v215_v25  ;;  %v224_v30 = vstv %s426_s4  ;;  %s432_s8 = sld [smem:[#allocation2 + $0x1d]] }
  0x54   : > { %v225_v31 = vsel %vm219_vm6, %v224_v30, %v218_v27  ;;  %v228_v32 = vstv %s427_s3  ;;  %s433_s14 = sld [smem:[#allocation2 + $0xb]] }
  0x55   : > { %v229_v33 = vsel %vm226_vm7, %v228_v32, %v222_v29  ;;  %v231_v34 = vstv %s428_s17  ;;  %s434_s19 = sld [smem:[#allocation2 + $0x1e]] }
  0x56   : > { %v232_v35 = vsel %vm226_vm7, %v231_v34, %v225_v31  ;;  %v235_v36 = vstv %s429_s5  ;;  %s435_s20 = sld [smem:[#allocation2 + $0xc]] }
  0x57   : > { %v236_v37 = vsel %vm233_vm8, %v235_v36, %v229_v33  ;;  %v238_v38 = vstv %s430_s6  ;;  %s436_s21 = sld [smem:[#allocation2 + $0x1f]] }
  0x58   : > { %v239_v39 = vsel %vm233_vm8, %v238_v38, %v232_v35  ;;  %v242_v40 = vstv %s431_s7  ;;  %s437_s15 = sld [smem:[#allocation2 + $0xd]] }
  0x59   : > { %v243_v41 = vsel %vm240_vm9, %v242_v40, %v236_v37  ;;  %v245_v42 = vstv %s432_s8  ;;  %s438_s22 = sld [smem:[#allocation2 + $0x20]]  ;;  %s450_s8 = sshll.u32 %s658_s13, 7 }
  0x5a   : > { %v246_v43 = vsel %vm240_vm9, %v245_v42, %v239_v39  ;;  %v249_v44 = vstv %s433_s14  ;;  %s439_s23 = sld [smem:[#allocation2 + $0xe]]  ;;  %s170_s14 = scalar_lea.vmem [#allocation7], %s410_s30 }
  0x5b   : > { %v250_v45 = vsel %vm247_vm10, %v249_v44, %v243_v41  ;;  %v252_v46 = vstv %s434_s19  ;;  %s440_s26 = sld [smem:[#allocation2 + $0x21]]  ;;  %s320_s19 = sshll.u32 %s170_s14, 4  ;;  %s321_s19 = int_to_ptr.vmem [resolvable:$true] %s320_s19 }
  0x5c   : > { %v253_v47 = vsel %vm247_vm10, %v252_v46, %v246_v43  ;;  %v256_v48 = vstv %s435_s20  ;;  %s441_s27 = sld [smem:[#allocation2 + $0xf]] }
  0x5d   : > { %v257_v49 = vsel %vm254_vm11, %v256_v48, %v250_v45  ;;  %v259_v50 = vstv %s436_s21  ;;  %s442_s28 = sld [smem:[#allocation2 + $0x22]] }
  0x5e   : > { %v260_v51 = vsel %vm254_vm11, %v259_v50, %v253_v47  ;;  %v263_v52 = vstv %s437_s15  ;;  %s443_s4 = sld [smem:[#allocation2 + $0x10]]  ;;  %s318_s15 = scalar_lea.hbm %s810_s2, %s450_s8 }
  0x5f   : > { %v264_v53 = vsel %vm261_vm12, %v263_v52, %v257_v49  ;;  %v266_v54 = vstv %s438_s22  ;;  %s444_s3 = sld [smem:[#allocation2 + $0x23]]  ;;  %s307_s22 = scalar_lea.sflag [#allocation4], %s740_s29 }
  0x60   : > { %v267_v55 = vsel %vm261_vm12, %v266_v54, %v260_v51  ;;  %v270_v56 = vstv %s439_s23  ;;  %s445_s17 = sld [smem:[#allocation2 + $0x11]]  ;;  %s549_s23 = scalar_lea.vmem %s321_s19, 128 }
  0x61   : > { %v271_v57 = vsel %vm268_vm13, %v270_v56, %v264_v53  ;;  %v273_v58 = vstv %s440_s26  ;;  %s446_s5 = sld [smem:[#allocation2 + $0x24]]  ;;  %p550_p6 = scmp.ne.s32.totalorder %s321_s19, %s549_s23 }
  0x62   : > { %v274_v59 = vsel %vm268_vm13, %v273_v58, %v267_v55  ;;  %v277_v60 = vstv %s441_s27  ;;  %s447_s6 = sld [smem:[#allocation2 + $0x12]]  ;;  %s621_s26 = smov [#allocation7]  }
  0x63   : > { %v278_v61 = vsel %vm275_vm14, %v277_v60, %v271_v57  ;;  %v280_v62 = vstv %s442_s28  ;;  %s448_s7 = sld [smem:[#allocation2 + $0x25]]  ;;  %p551_p7 = pnand %p550_p6, %p824_p8 }
  0x64   : > { %v281_v63 = vsel %vm275_vm14, %v280_v62, %v274_v59  ;;  %v284_v0 = vstv %s443_s4  ;;  %s553_s13 = sshll.u32 %s621_s26, 4  ;;  %s554_s13 = int_to_ptr.vmem [resolvable:$false] %s553_s13 }
  0x65   : > { %v285_v2 = vsel %vm282_vm15, %v284_v0, %v278_v61  ;;  %v287_v3 = vstv %s444_s3  ;;  %p552_p10 = pneg %p551_p7  ;;  %s555_s30 = scalar_lea.vmem %s554_s13, 256 }
  0x66   : > { %v288_v4 = vsel %vm282_vm15, %v287_v3, %v281_v63  ;;  %v291_v5 = vstv %s445_s17  ;;  %p556_p11 = scmp.lt.s32.totalorder %s321_s19, %s554_s13  ;;  %p557_p0 = scmp.lt.s32.totalorder %s555_s30, %s549_s23 }
  0x67   : > { %v292_v6 = vsel %vm289_vm0, %v291_v5, %v285_v2  ;;  %v294_v7 = vstv %s446_s5 }
  0x68   : > { %v295_v8 = vsel %vm289_vm0, %v294_v7, %v288_v4  ;;  %v298_v9 = vstv %s447_s6  ;;  %p558_p3 = por %p557_p0, %p556_p11 }
  0x69   : > { %v301_v10 = vstv %s448_s7  ;;  %v299_v11 = vsel %vm296_vm1, %v298_v9, %v292_v6 }
  0x6a   : > { %v302_v12 = vsel %vm296_vm1, %v301_v10, %v295_v8  ;;  %p559_p5 = pnand %p558_p3, %p552_p10 }
  0x6b   : > { %v303_v13 = vmul.f32 %v302_v12, %v750_v1 }
  0x6d   : > { %v304_v14 = vadd.f32 %v303_v13, %v299_v11 }
  0x6f   : > { %305 = vst [vmem:[%s170_s14] sm:$0xff] %v304_v14 }
  0x70   : > { %562 = shalt.err (!%p559_p5)
}
  0x71   : > { %s563_s27 = scalar_lea.hbm %s318_s15, 128  ;;  %s567_s4 = scalar_lea.hbm %s810_s2, 256 }
  0x72   : > { %p564_p2 = scmp.ne.s32.totalorder %s318_s15, %s563_s27  ;;  %p568_p9 = scmp.lt.s32.totalorder %s318_s15, %s810_s2 }
  0x73   : > { %p569_p1 = scmp.lt.s32.totalorder %s567_s4, %s563_s27 }
  0x74   : > { %p565_p12 = pnand %p564_p2, %p824_p8 }
  0x75   : > { %p570_p4 = por %p569_p1, %p568_p9 }
  0x76   : > { %p566_p13 = pneg %p565_p12 }
  0x78   : > { %p571_p6 = pnand %p570_p4, %p566_p13 }
  0x7a   : > { %574 = shalt.err (!%p571_p6)
}
  0x7b   : > { %459 = dma.vmem_to_hbm [thread:$0]  (%p824_p8), %s321_s19, 128, %s318_s15, %s307_s22  }
  0x7c PF: > { %s332_s5 = sand.u32 1, %s605_s9   ;;  %p825_p7 = scmp.ne.s32.totalorder %s816_s16, 0 }
  0x7d   : > { %p826_p10 = scmp.ge.s32.totalorder %s617_s12, 2  ;;  %s333_s6 = scalar_lea.sflag [#allocation4], %s332_s5 }
  0x7f   : > { %p470_p11 = pnand %p826_p10, %p825_p7 }
  0x81   : > { %p471_p0 = pneg %p470_p11 }
  0x83   : > { %600 = dma.done.wait (%p471_p0), %s333_s6, 128  }
  0x84   : > { %602 = vsyncadd (%p471_p0), %s333_s6, 4294967168  ;;  %p16_p3 = scmp.ge.s32.totalorder %s683_s18, 4   ;;  %s827_s9 = smov %s609_s10 }
  0x85   : > { %s828_s10 = smov %s613_s11  ;;  %s829_s11 = smov %s700_s24 }
  0x86   : > { %s830_s12 = smov %s683_s18  ;;  %18 = sbr.rel (!%p16_p3) target bundleno = 6 (0x6), region = 78 }
  0x8b   :  { %338 = vsyncpa [#allocation3], 1 }
  0x8c   :  { %340 = vsyncpa [#allocation3 + $0x1], 1 }
  0x8d   :  { %341 = vsyncpa [#allocation4], 1 }
  0x8e   :  { %343 = vsyncpa [#allocation4 + $0x1], 1 }
  0x8f   :  { %344 = vsyncpa [#allocation5], 1 }
  0x90   :  { %346 = vsyncpa [#allocation5 + $0x1], 1 }

</bundles_post_ra>
